<compile_context>
chip_gen: v7x
topology: tpu7x:2x2x1
jax: 0.10.0
libtpu: 0.0.40
codegen_flags: <defaults>
</compile_context>

<pallas_src>
import functools

import jax
import jax.numpy as jnp
from jax import lax
from jax.experimental import pallas as pl
from jax.experimental.pallas import tpu as pltpu


def _am_softmax_kernel(emb_ref, w_ref, label_ref, out_ref, *, s, m, tn):
    # emb_ref:   (B, E)  f32 embeddings, resident across grid steps
    # w_ref:     (E, tn) f32 un-normalized class-kernel column tile
    # label_ref: (B, 1)  int32 target class per row, resident
    # out_ref:   (B, tn) f32 output logits tile
    j = pl.program_id(0)

    w = w_ref[...]                                               # (E, tn)
    # Per-column inverse L2 norm.  Clamp protects zero-norm columns and the
    # undefined lanes of a partial last tile (those lanes are discarded on
    # the masked output store anyway).
    col_sq = jnp.sum(w * w, axis=0, keepdims=True)               # (1, tn)
    inv_norm = pl.reciprocal(jnp.sqrt(jnp.maximum(col_sq, 1e-24)), approx=False)

    # Normalize after the matmul: (emb @ w) * inv_norm == emb @ (w * inv_norm)
    # but costs a (B, tn) multiply instead of an (E, tn) one (E >> B).
    raw = jnp.dot(emb_ref[...], w, preferred_element_type=jnp.float32)
    cos_theta = jnp.clip(raw * inv_norm, -1.0, 1.0)              # (B, tn)

    phi = cos_theta - m

    # The PyTorch in-place scatter_ at (i, label[i]) becomes a lane-id select.
    B = cos_theta.shape[0]
    labels = label_ref[...]                                      # (B, 1) int32
    col_ids = j * tn + lax.broadcasted_iota(jnp.int32, (B, tn), 1)
    is_target = labels == col_ids                                # (B, tn) bool

    out_ref[...] = (jnp.where(is_target, phi, cos_theta) * s).astype(out_ref.dtype)


def am_softmax_forward(embeddings, kernel, label, *, s=30.0, m=0.35, tn=2048):
    """embeddings: (B, E) f32, kernel: (E, C) f32, label: (B,) int -> (B, C) f32."""
    B, E = embeddings.shape
    E2, C = kernel.shape
    assert E == E2

    # Large lane-dense class tile.  If C fits in one tile, use the full dim
    # (a block equal to the full array dim needs no 128-multiple alignment).
    if C <= tn:
        tn = C
    grid = (pl.cdiv(C, tn),)

    # Double-buffered weight + output tiles, resident embeddings + labels,
    # plus headroom.  Keeps us within default scoped VMEM on v5e and well
    # under the 64 MiB physical VMEM of v7x.
    vmem_bytes = 4 * (2 * E * tn + 2 * B * tn + B * E + B) + (2 << 20)
    vmem_limit = min(max(vmem_bytes, 16 << 20), 64 << 20)

    kern = functools.partial(_am_softmax_kernel, s=float(s), m=float(m), tn=tn)
    label2d = label.astype(jnp.int32).reshape(B, 1)

    # TODO(synk): if weight traffic is still the bottleneck, stream `kernel`
    # as bf16 (halves HBM bytes); kept f32 here to match reference exactly.
    return pl.pallas_call(
        kern,
        out_shape=jax.ShapeDtypeStruct((B, C), jnp.float32),
        grid_spec=pltpu.PrefetchScalarGridSpec(
            num_scalar_prefetch=0,
            grid=grid,
            in_specs=[
                pl.BlockSpec((B, E), lambda j: (0, 0)),    # embeddings, resident
                pl.BlockSpec((E, tn), lambda j: (0, j)),   # weight column tile
                pl.BlockSpec((B, 1), lambda j: (0, 0)),    # labels, resident
            ],
            out_specs=pl.BlockSpec((B, tn), lambda j: (0, j)),
        ),
        compiler_params=pltpu.CompilerParams(
            dimension_semantics=("parallel",),
            vmem_limit_bytes=vmem_limit,
        ),
    )(embeddings, kernel, label2d)


def am_softmax_reference(embeddings, kernel, label, *, s=30.0, m=0.35):
    """Pure-JAX reference mirroring the PyTorch forward."""
    kernel_norm = kernel / jnp.linalg.norm(kernel, ord=2, axis=0, keepdims=True)
    cos_theta = jnp.clip(embeddings @ kernel_norm, -1.0, 1.0)
    phi = cos_theta - m
    one_hot = jax.nn.one_hot(label, kernel.shape[1], dtype=jnp.bool_)
    return jnp.where(one_hot, phi, cos_theta) * s


if __name__ == "__main__":
    # Small deterministic setup (module defaults are E=512, C=51332; use
    # reduced shapes).  C is deliberately NOT a multiple of 128 to exercise
    # the cdiv grid / partial-tail path that production C=51332 needs.
    B, E, C = 8, 128, 1000
    key = jax.random.PRNGKey(0)
    k_emb, k_w, k_lab = jax.random.split(key, 3)

    embeddings = jax.random.normal(k_emb, (B, E), dtype=jnp.float32)
    # PyTorch init: uniform(-1,1).renorm_(2,1,1e-5).mul_(1e5) -> unit-norm columns.
    w = jax.random.uniform(k_w, (E, C), dtype=jnp.float32, minval=-1.0, maxval=1.0)
    w = w / jnp.maximum(jnp.linalg.norm(w, axis=0, keepdims=True), 1e-5)
    label = jax.random.randint(k_lab, (B,), 0, C, dtype=jnp.int32)

    ref = am_softmax_reference(embeddings, w, label)

    # Multi-tile path with a partial last tile (C % tn != 0).
    out_tiled = jax.block_until_ready(am_softmax_forward(embeddings, w, label, tn=256))
    # Default large-tile path (single full-width block since C <= 2048).
    out_full = jax.block_until_ready(am_softmax_forward(embeddings, w, label))

    assert out_tiled.shape == (B, C) and out_tiled.dtype == jnp.float32
    assert jnp.allclose(out_tiled, ref, atol=1e-3, rtol=1e-3), float(
        jnp.max(jnp.abs(out_tiled - ref)))
    assert jnp.allclose(out_full, ref, atol=1e-3, rtol=1e-3), float(
        jnp.max(jnp.abs(out_full - ref)))

    print("KERNEL_OK")
</pallas_src>

<mosaic_0001>
module attributes {stable_mosaic.version = 11 : i64} {
  func.func @_am_softmax_kernel(%arg0: i32, %arg1: memref<8x128xf32, #tpu.memory_space<vmem>>, %arg2: memref<128x256xf32, #tpu.memory_space<vmem>>, %arg3: memref<8x1xi32, #tpu.memory_space<vmem>>, %arg4: memref<8x256xf32, #tpu.memory_space<vmem>>) attributes {dimension_semantics = [#tpu.dimension_semantics<parallel>], iteration_bounds = array<i64: 4>, scalar_prefetch = 0 : i64, scratch_operands = 0 : i64, tpu.core_type = #tpu.core_type<tc>, window_params = [{pipeline_mode = #tpu.pipeline_mode<synchronous>, transform_indices = @transform_0, window_bounds = array<i64: 8, 128>}, {transform_indices = @transform_1, window_bounds = array<i64: 128, 256>}, {pipeline_mode = #tpu.pipeline_mode<synchronous>, transform_indices = @transform_2, window_bounds = array<i64: 8, 1>}, {transform_indices = @transform_3, window_bounds = array<i64: 8, 256>}]} {
    %c0 = arith.constant 0 : index
    %c0_0 = arith.constant 0 : index
    %0 = vector.load %arg2[%c0, %c0_0] : memref<128x256xf32, #tpu.memory_space<vmem>>, vector<128x256xf32>
    %1 = arith.mulf %0, %0 : vector<128x256xf32>
    %cst = arith.constant dense<0.000000e+00> : vector<256xf32>
    %2 = vector.multi_reduction <add>, %1, %cst [0] : vector<128x256xf32> to vector<256xf32>
    %3 = vector.shape_cast %2 : vector<256xf32> to vector<1x256xf32>
    %cst_1 = arith.constant 1.000000e-24 : f32
    %4 = vector.broadcast %cst_1 : f32 to vector<1x256xf32>
    %5 = arith.maximumf %3, %4 : vector<1x256xf32>
    %6 = math.sqrt %5 : vector<1x256xf32>
    %7 = tpu.reciprocal %6 : vector<1x256xf32> -> vector<1x256xf32>
    %c0_2 = arith.constant 0 : index
    %c0_3 = arith.constant 0 : index
    %8 = vector.load %arg1[%c0_2, %c0_3] : memref<8x128xf32, #tpu.memory_space<vmem>>, vector<8x128xf32>
    %cst_4 = arith.constant dense<0.000000e+00> : vector<8x256xf32>
    %9 = tpu.matmul %8, %0, %cst_4 {dimension_numbers = #tpu.dot_dimension_numbers<[1], [0], [0], [1], [0, 0, 1, 1], [], []>} : vector<8x128xf32>, vector<128x256xf32>, vector<8x256xf32> -> vector<8x256xf32>
    %10 = vector.broadcast %7 : vector<1x256xf32> to vector<8x256xf32>
    %11 = arith.mulf %9, %10 : vector<8x256xf32>
    %cst_5 = arith.constant -1.000000e+00 : f32
    %cst_6 = arith.constant 1.000000e+00 : f32
    %12 = vector.broadcast %cst_5 : f32 to vector<8x256xf32>
    %13 = arith.maximumf %12, %11 : vector<8x256xf32>
    %14 = vector.broadcast %cst_6 : f32 to vector<8x256xf32>
    %15 = arith.minimumf %14, %13 : vector<8x256xf32>
    %cst_7 = arith.constant 3.500000e-01 : f32
    %16 = vector.broadcast %cst_7 : f32 to vector<8x256xf32>
    %17 = arith.subf %15, %16 : vector<8x256xf32>
    %c0_8 = arith.constant 0 : index
    %c0_9 = arith.constant 0 : index
    %18 = vector.load %arg3[%c0_8, %c0_9] : memref<8x1xi32, #tpu.memory_space<vmem>>, vector<8x1xi32>
    %c256_i32 = arith.constant 256 : i32
    %19 = arith.muli %arg0, %c256_i32 : i32
    %20 = tpu.iota {dimensions = array<i32: 1>} : vector<8x256xi32>
    %21 = vector.broadcast %19 : i32 to vector<8x256xi32>
    %22 = arith.addi %21, %20 : vector<8x256xi32>
    %23 = vector.broadcast %18 : vector<8x1xi32> to vector<8x256xi32>
    %24 = arith.cmpi eq, %23, %22 : vector<8x256xi32>
    %25 = arith.select %24, %17, %15 : vector<8x256xi1>, vector<8x256xf32>
    %cst_10 = arith.constant 3.000000e+01 : f32
    %26 = vector.broadcast %cst_10 : f32 to vector<8x256xf32>
    %27 = arith.mulf %25, %26 : vector<8x256xf32>
    %c0_11 = arith.constant 0 : index
    %c0_12 = arith.constant 0 : index
    %28 = vector.load %arg4[%c0_11, %c0_12] : memref<8x256xf32, #tpu.memory_space<vmem>>, vector<8x256xf32>
    tpu.vector_store %arg4[%c0_11, %c0_12], %27 {strides = array<i32>} : memref<8x256xf32, #tpu.memory_space<vmem>>, vector<8x256xf32>,
    return
  }
  func.func @transform_0(%arg0: i32) -> (i32, i32) {
    %c0_i32 = arith.constant 0 : i32
    %c0_i32_0 = arith.constant 0 : i32
    %c0_i32_1 = arith.constant 0 : i32
    return %c0_i32, %c0_i32_0 : i32, i32
  }
  func.func @transform_1(%arg0: i32) -> (i32, i32) {
    %c0_i32 = arith.constant 0 : i32
    %c0_i32_0 = arith.constant 0 : i32
    return %c0_i32, %arg0 : i32, i32
  }
  func.func @transform_2(%arg0: i32) -> (i32, i32) {
    %c0_i32 = arith.constant 0 : i32
    %c0_i32_0 = arith.constant 0 : i32
    %c0_i32_1 = arith.constant 0 : i32
    return %c0_i32, %c0_i32_0 : i32, i32
  }
  func.func @transform_3(%arg0: i32) -> (i32, i32) {
    %c0_i32 = arith.constant 0 : i32
    %c0_i32_0 = arith.constant 0 : i32
    return %c0_i32, %arg0 : i32, i32
  }
}

</mosaic_0001>

<bundles_post_ra>
// kernel: tpu_custom_call.1
= control target key start
LH: loop header
LB: loop body
LE: loop exit
PB: predicated region body
PF: predicated region fallthrough
CT: control target
= control target key end

     0   :  { %8 = vsyncpa [#allocation4], 0  ;;  %s961_s0 = inlined_call_operand.vmem [shape: f32[8,128], index: 0, kind: input, shape index: {}]   ;;  %s962_s1 = inlined_call_operand.vmem [shape: f32[128,1000], index: 1, kind: input, shape index: {}]   ;;  %s963_s2 = inlined_call_operand.vmem [shape: s32[8,1], index: 2, kind: input, shape index: {}]   ;;  %s964_s3 = inlined_call_operand.hbm [shape: f32[8,1000], index: 3, kind: output, shape index: {}]  }
   0x1   :  { %10 = vsyncpa [#allocation4 + $0x1], 0  ;;  %s746_s12 = smov 0   ;;  %s748_s13 = smov 0  }
   0x2   :  { %s750_s14 = smov 0   ;;  %s752_s15 = smov 0  }
   0x3 LB: > { %s555_s16 = sadd.s32 4294967295, %s721_s15   ;;  %s556_s17 = sadd.s32 4294967294, %s721_s15   ;;  %s721_s15 = sphi %s752_s15, %s970_s15   ;;  %s717_s14 = sphi %s750_s14, %s969_s14   ;;  %s713_s13 = sphi %s748_s13, %s968_s13   ;;  %s709_s12 = sphi %s746_s12, %s967_s12  }
   0x4   : > { %s769_s18 = sadd.s32 1, %s721_s15   ;;  %s44_s19 = sadd.s32 1, %s717_s14 }
   0x5   : > { %s41_s20 = ssub.s32 %s721_s15, %s769_s18  ;;  %p51_p0 = scmp.ne.s32.totalorder %s717_s14, %s713_s13 }
   0x6   : > { %p42_p1 = scmp.eq.s32.totalorder %s41_s20, 0  ;;  %p52_p2 = scmp.eq.s32.totalorder %s721_s15, 0 }
   0x7   : > { %p102_p3 = scmp.eq.s32.totalorder %s555_s16, 3  ;;  %p107_p4 = scmp.ne.s32.totalorder %s713_s13, %s709_s12 }
   0x8   : > { %s782_s21 = scalar_select %p42_p1, %s717_s14, %s44_s19  }
   0x9   : > { %p53_p5 = por %p52_p2, %p51_p0  ;;  %p784_p6 = por %p102_p3, %p51_p0 }
   0xa   : > { %p108_p7 = scmp.eq.s32.totalorder %s556_s17, 3  ;;  %p558_p9 = scmp.ge.s32.totalorder %s721_s15, 4 }
   0xc   : > { %p788_p8 = por %p108_p7, %p107_p4  ;;  %130 = sbr.rel (%p558_p9) target bundleno = 39 (0x27), region = 24 }
  0x13   : > { %133 = sbr.rel (!%p53_p5) target bundleno = 39 (0x27), region = 28  ;;  %s135_s24 = sand.u32 (%p53_p5), 1, %s717_s14  }
  0x14   : > { %s575_s25 = sshll.u32 (%p53_p5), %s721_s15, 4  ;;  %s559_s26 = sshll.u32 (%p53_p5), %s135_s24, 8 }
  0x15   : > { %s798_s29 = scalar_lea.vmem (%p53_p5), %s962_s1, %s575_s25  ;;  %s803_s30 = scalar_lea.vmem (%p53_p5), [#allocation2], %s559_s26 }
  0x16   : > { %v153_v0 = vld [vmem:[%s798_s29] sm:$0xff] (%p53_p5)  ;;  %v155_v1 = vld [vmem:[%s798_s29 + $0x8] sm:$0xff] (%p53_p5) }
  0x17   : > { %v157_v2 = vld [vmem:[%s798_s29 + $0x40] sm:$0xff] (%p53_p5)  ;;  %154 = vst [vmem:[%s803_s30] sm:$0xff] (%p53_p5), %v153_v0  ;;  %156 = vst [vmem:[%s803_s30 + $0x8] sm:$0xff] (%p53_p5), %v155_v1  ;;  %v159_v3 = vld [vmem:[%s798_s29 + $0x48] sm:$0xff] (%p53_p5) }
  0x18   : > { %158 = vst [vmem:[%s803_s30 + $0x10] sm:$0xff] (%p53_p5), %v157_v2  ;;  %v161_v4 = vld [vmem:[%s798_s29 + $0x80] sm:$0xff] (%p53_p5)  ;;  %v163_v5 = vld [vmem:[%s798_s29 + $0x88] sm:$0xff] (%p53_p5)  ;;  %160 = vst [vmem:[%s803_s30 + $0x18] sm:$0xff] (%p53_p5), %v159_v3 }
  0x19   : > { %162 = vst [vmem:[%s803_s30 + $0x20] sm:$0xff] (%p53_p5), %v161_v4  ;;  %164 = vst [vmem:[%s803_s30 + $0x28] sm:$0xff] (%p53_p5), %v163_v5  ;;  %v165_v6 = vld [vmem:[%s798_s29 + $0xc0] sm:$0xff] (%p53_p5)  ;;  %v167_v7 = vld [vmem:[%s798_s29 + $0xc8] sm:$0xff] (%p53_p5) }
  0x1a   : > { %v169_v8 = vld [vmem:[%s798_s29 + $0x100] sm:$0xff]  ;;  %166 = vst [vmem:[%s803_s30 + $0x30] sm:$0xff] %v165_v6  ;;  %168 = vst [vmem:[%s803_s30 + $0x38] sm:$0xff] %v167_v7  ;;  %v171_v9 = vld [vmem:[%s798_s29 + $0x108] sm:$0xff] }
  0x1b   : > { %170 = vst [vmem:[%s803_s30 + $0x40] sm:$0xff] %v169_v8  ;;  %v173_v10 = vld [vmem:[%s798_s29 + $0x140] sm:$0xff]  ;;  %v175_v11 = vld [vmem:[%s798_s29 + $0x148] sm:$0xff]  ;;  %172 = vst [vmem:[%s803_s30 + $0x48] sm:$0xff] %v171_v9 }
  0x1c   : > { %174 = vst [vmem:[%s803_s30 + $0x50] sm:$0xff] %v173_v10  ;;  %176 = vst [vmem:[%s803_s30 + $0x58] sm:$0xff] %v175_v11  ;;  %v177_v12 = vld [vmem:[%s798_s29 + $0x180] sm:$0xff]  ;;  %v179_v13 = vld [vmem:[%s798_s29 + $0x188] sm:$0xff] }
  0x1d   : > { %v181_v14 = vld [vmem:[%s798_s29 + $0x1c0] sm:$0xff]  ;;  %178 = vst [vmem:[%s803_s30 + $0x60] sm:$0xff] %v177_v12  ;;  %180 = vst [vmem:[%s803_s30 + $0x68] sm:$0xff] %v179_v13  ;;  %v183_v15 = vld [vmem:[%s798_s29 + $0x1c8] sm:$0xff] }
  0x1e   : > { %182 = vst [vmem:[%s803_s30 + $0x70] sm:$0xff] %v181_v14  ;;  %v185_v16 = vld [vmem:[%s798_s29 + $0x200] sm:$0xff]  ;;  %v187_v17 = vld [vmem:[%s798_s29 + $0x208] sm:$0xff]  ;;  %184 = vst [vmem:[%s803_s30 + $0x78] sm:$0xff] %v183_v15 }
  0x1f   : > { %186 = vst [vmem:[%s803_s30 + $0x80] sm:$0xff] %v185_v16  ;;  %188 = vst [vmem:[%s803_s30 + $0x88] sm:$0xff] %v187_v17  ;;  %v189_v18 = vld [vmem:[%s798_s29 + $0x240] sm:$0xff]  ;;  %v191_v19 = vld [vmem:[%s798_s29 + $0x248] sm:$0xff] }
  0x20   : > { %v193_v20 = vld [vmem:[%s798_s29 + $0x280] sm:$0xff]  ;;  %190 = vst [vmem:[%s803_s30 + $0x90] sm:$0xff] %v189_v18  ;;  %192 = vst [vmem:[%s803_s30 + $0x98] sm:$0xff] %v191_v19  ;;  %v195_v21 = vld [vmem:[%s798_s29 + $0x288] sm:$0xff] }
  0x21   : > { %194 = vst [vmem:[%s803_s30 + $0xa0] sm:$0xff] %v193_v20  ;;  %v197_v22 = vld [vmem:[%s798_s29 + $0x2c0] sm:$0xff]  ;;  %v199_v23 = vld [vmem:[%s798_s29 + $0x2c8] sm:$0xff]  ;;  %196 = vst [vmem:[%s803_s30 + $0xa8] sm:$0xff] %v195_v21 }
  0x22   : > { %198 = vst [vmem:[%s803_s30 + $0xb0] sm:$0xff] %v197_v22  ;;  %200 = vst [vmem:[%s803_s30 + $0xb8] sm:$0xff] %v199_v23  ;;  %v201_v24 = vld [vmem:[%s798_s29 + $0x300] sm:$0xff]  ;;  %v203_v25 = vld [vmem:[%s798_s29 + $0x308] sm:$0xff] }
  0x23   : > { %v205_v26 = vld [vmem:[%s798_s29 + $0x340] sm:$0xff]  ;;  %202 = vst [vmem:[%s803_s30 + $0xc0] sm:$0xff] %v201_v24  ;;  %204 = vst [vmem:[%s803_s30 + $0xc8] sm:$0xff] %v203_v25  ;;  %v207_v27 = vld [vmem:[%s798_s29 + $0x348] sm:$0xff] }
  0x24   : > { %206 = vst [vmem:[%s803_s30 + $0xd0] sm:$0xff] %v205_v26  ;;  %v209_v28 = vld [vmem:[%s798_s29 + $0x380] sm:$0xff]  ;;  %v211_v29 = vld [vmem:[%s798_s29 + $0x388] sm:$0xff]  ;;  %208 = vst [vmem:[%s803_s30 + $0xd8] sm:$0xff] %v207_v27 }
  0x25   : > { %210 = vst [vmem:[%s803_s30 + $0xe0] sm:$0xff] %v209_v28  ;;  %212 = vst [vmem:[%s803_s30 + $0xe8] sm:$0xff] %v211_v29  ;;  %v213_v30 = vld [vmem:[%s798_s29 + $0x3c0] sm:$0xff]  ;;  %v215_v31 = vld [vmem:[%s798_s29 + $0x3c8] sm:$0xff] }
  0x26   : > { %214 = vst [vmem:[%s803_s30 + $0xf0] sm:$0xff] %v213_v30  ;;  %216 = vst [vmem:[%s803_s30 + $0xf8] sm:$0xff] %v215_v31 }
  0x27 PF: > { %p562_p10 = scmp.ge.s32.totalorder %s721_s15, 1  ;;  %p221_p11 = scmp.lt.s32.totalorder %s721_s15, 5 }
  0x29   : > { %p222_p12 = pnand %p562_p10, %p221_p11 }
  0x2a   : > { %s869_s4 = sand.u32 (!%p222_p12), 1, %s713_s13   ;;  %v457_v32 = vld [vmem:[%s963_s2] sm:$0xff] (!%p222_p12)  ;;  %v723_v33 = vmov (!%p222_p12), 0.0   ;;  %v724_v34 = vmov (!%p222_p12), 0   ;;  %s569_s11 = sshll.u32 (!%p222_p12), %s555_s16, 8 }
  0x2b   : > { %225 = sbr.rel (%p222_p12) target bundleno = 316 (0x13c), region = 51  ;;  %s563_s7 = sshll.u32 (!%p222_p12), %s869_s4, 8  ;;  %442 = vmatprep.mubr.f32.mxu0 (!%p222_p12), %v723_v33  ;;  %650 = vset.pattern.permute.xlu0 (!%p222_p12), %v724_v34 }
  0x2c   : > { %466 = vperm.xlu0 (!%p222_p12), %650, %v457_v32   ;;  %s875_s8 = scalar_lea.vmem (!%p222_p12), [#allocation2], %s563_s7  ;;  %s564_s17 = sshll.u32 (!%p222_p12), %s869_s4, 4 }
  0x2d   : > { %v254_v35 = vld [vmem:[%s875_s8 + $0x8] sm:$0xff] (!%p222_p12)  ;;  %v256_v36 = vld [vmem:[%s875_s8 + $0x18] sm:$0xff] (!%p222_p12)  ;;  %v253_v37 = vld [vmem:[%s875_s8] sm:$0xff] (!%p222_p12)  ;;  %s250_s16 = scalar_lea.vmem (!%p222_p12), [#allocation3], %s564_s17  ;;  %s918_s25 = scalar_lea.hbm (!%p222_p12), %s964_s3, %s569_s11 }
  0x2e   : > { %v286_v38 = vmul.f32 (!%p222_p12), %v254_v35, %v254_v35  ;;  %v288_v39 = vmul.f32 (!%p222_p12), %v256_v36, %v256_v36  ;;  %v577_v40 = vpack.c.bf16 (!%p222_p12), %v256_v36, %v254_v35  ;;  %v255_v41 = vld [vmem:[%s875_s8 + $0x10] sm:$0xff] (!%p222_p12)  ;;  %v285_v42 = vmul.f32 (!%p222_p12), %v253_v37, %v253_v37  ;;  %v258_v43 = vld [vmem:[%s875_s8 + $0x28] sm:$0xff] (!%p222_p12)  ;;  %v260_v44 = vld [vmem:[%s875_s8 + $0x38] sm:$0xff] (!%p222_p12)  ;;  %s491_s19 = sshll.u32 (!%p222_p12), %s250_s16, 4  ;;  %s477_s26 = scalar_lea.sflag (!%p222_p12), [#allocation4], %s869_s4  ;;  %s920_s19 = int_to_ptr.vmem [resolvable:$true] %s491_s19 }
  0x2f   : > { %v287_v45 = vmul.f32 (!%p222_p12), %v255_v41, %v255_v41  ;;  %v579_v46 = vpack.c.bf16 (!%p222_p12), %v255_v41, %v253_v37  ;;  %v290_v47 = vmul.f32 (!%p222_p12), %v258_v43, %v258_v43  ;;  %v257_v48 = vld [vmem:[%s875_s8 + $0x20] sm:$0xff] (!%p222_p12)  ;;  %v259_v49 = vld [vmem:[%s875_s8 + $0x30] sm:$0xff] (!%p222_p12)  ;;  %v262_v50 = vld [vmem:[%s875_s8 + $0x48] sm:$0xff] (!%p222_p12)  ;;  %v292_v52 = vmul.f32 (!%p222_p12), %v260_v44, %v260_v44  ;;  %s659_s27 = scalar_lea.vmem (!%p222_p12), %s920_s19, 256  ;;  %s725_s28 = smov (!%p222_p12), [#allocation3]  }
  0x30   : > { %v338_v51 = vadd.f32 (!%p222_p12), %v288_v39, %v286_v38  ;;  %578 = vmatprep.subr.bf16.mxu0 (!%p222_p12), %v577_v40  ;;  %v581_v53 = vpack.c.bf16 (!%p222_p12), %v260_v44, %v258_v43  ;;  %v289_v54 = vmul.f32 (!%p222_p12), %v257_v48, %v257_v48  ;;  %v264_v55 = vld [vmem:[%s875_s8 + $0x58] sm:$0xff] (!%p222_p12)  ;;  %v291_v57 = vmul.f32 (!%p222_p12), %v259_v49, %v259_v49  ;;  %v261_v62 = vld [vmem:[%s875_s8 + $0x40] sm:$0xff] (!%p222_p12)  ;;  %v263_v63 = vld [vmem:[%s875_s8 + $0x50] sm:$0xff] (!%p222_p12)  ;;  %p660_p13 = scmp.ne.s32.totalorder (!%p222_p12), %s920_s19, %s659_s27  ;;  %s663_s29 = sshll.u32 (!%p222_p12), %s725_s28, 4  ;;  %s664_s29 = int_to_ptr.vmem [resolvable:$false] %s663_s29 }
  0x31   : > { %v317_v56 = vadd.f32 (!%p222_p12), %v287_v45, %v285_v42  ;;  %580 = vmatpush1.bf16.msra.mxu0 (!%p222_p12), %v579_v46  ;;  %v583_v58 = vpack.c.bf16 (!%p222_p12), %v259_v49, %v257_v48  ;;  %v294_v60 = vmul.f32 (!%p222_p12), %v262_v50, %v262_v50  ;;  %v585_v61 = vpack.c.bf16 (!%p222_p12), %v264_v55, %v262_v50  ;;  %v266_v2 = vld [vmem:[%s875_s8 + $0x68] sm:$0xff] (!%p222_p12)  ;;  %v268_v3 = vld [vmem:[%s875_s8 + $0x78] sm:$0xff] (!%p222_p12)  ;;  %v265_v12 = vld [vmem:[%s875_s8 + $0x60] sm:$0xff] (!%p222_p12)  ;;  %s665_s30 = scalar_lea.vmem (!%p222_p12), %s664_s29, 512  ;;  %p666_p2 = scmp.lt.s32.totalorder (!%p222_p12), %s920_s19, %s664_s29 }
  0x32   : > { %v339_v59 = vadd.f32 %v338_v51, %v290_v47  ;;  %582 = vmatprep.subr.bf16.mxu0 %v581_v53  ;;  %v293_v1 = vmul.f32 %v261_v62, %v261_v62  ;;  %v296_v5 = vmul.f32 %v264_v55, %v264_v55  ;;  %v295_v7 = vmul.f32 %v263_v63, %v263_v63  ;;  %v267_v13 = vld [vmem:[%s875_s8 + $0x70] sm:$0xff]  ;;  %v270_v16 = vld [vmem:[%s875_s8 + $0x88] sm:$0xff]  ;;  %v272_v17 = vld [vmem:[%s875_s8 + $0x98] sm:$0xff]  ;;  %p661_p0 = pnand %p660_p13, %p784_p6  ;;  %p667_p3 = scmp.lt.s32.totalorder %s665_s30, %s659_s27 }
  0x33   : > { %v318_v0 = vadd.f32 %v317_v56, %v289_v54  ;;  %v587_v8 = vpack.c.bf16 %v263_v63, %v261_v62  ;;  %v298_v10 = vmul.f32 %v266_v2, %v266_v2  ;;  %v589_v11 = vpack.c.bf16 %v268_v3, %v266_v2  ;;  %v269_v26 = vld [vmem:[%s875_s8 + $0x80] sm:$0xff]  ;;  %v271_v27 = vld [vmem:[%s875_s8 + $0x90] sm:$0xff]  ;;  %v274_v30 = vld [vmem:[%s875_s8 + $0xa8] sm:$0xff] }
  0x34   : > { %v340_v4 = vadd.f32 %v339_v59, %v292_v52  ;;  %v297_v15 = vmul.f32 %v265_v12, %v265_v12  ;;  %v300_v19 = vmul.f32 %v268_v3, %v268_v3  ;;  %v299_v21 = vmul.f32 %v267_v13, %v267_v13  ;;  %v276_v31 = vld [vmem:[%s875_s8 + $0xb8] sm:$0xff]  ;;  %v273_v40 = vld [vmem:[%s875_s8 + $0xa0] sm:$0xff]  ;;  %v275_v41 = vld [vmem:[%s875_s8 + $0xb0] sm:$0xff]  ;;  %p662_p1 = pneg %p661_p0  ;;  %p668_p4 = por %p667_p3, %p666_p2 }
  0x35   : > { %v319_v6 = vadd.f32 %v318_v0, %v291_v57  ;;  %584 = vmatpush1.bf16.msra.mxu0 %v583_v58  ;;  %v591_v22 = vpack.c.bf16 %v267_v13, %v265_v12  ;;  %v302_v24 = vmul.f32 %v270_v16, %v270_v16  ;;  %v593_v25 = vpack.c.bf16 %v272_v17, %v270_v16  ;;  %v278_v44 = vld [vmem:[%s875_s8 + $0xc8] sm:$0xff]  ;;  %v280_v45 = vld [vmem:[%s875_s8 + $0xd8] sm:$0xff]  ;;  %v277_v54 = vld [vmem:[%s875_s8 + $0xc0] sm:$0xff] }
  0x36   : > { %v341_v9 = vadd.f32 %v340_v4, %v294_v60  ;;  %586 = vmatprep.subr.bf16.mxu0 %v585_v61  ;;  %v301_v29 = vmul.f32 %v269_v26, %v269_v26  ;;  %v304_v33 = vmul.f32 %v272_v17, %v272_v17  ;;  %v303_v35 = vmul.f32 %v271_v27, %v271_v27  ;;  %v279_v55 = vld [vmem:[%s875_s8 + $0xd0] sm:$0xff]  ;;  %v282_v58 = vld [vmem:[%s875_s8 + $0xe8] sm:$0xff]  ;;  %v284_v59 = vld [vmem:[%s875_s8 + $0xf8] sm:$0xff]  ;;  %p669_p5 = pnand %p668_p4, %p662_p1 }
  0x37   : > { %v320_v14 = vadd.f32 %v319_v6, %v293_v1  ;;  %v595_v36 = vpack.c.bf16 %v271_v27, %v269_v26  ;;  %v306_v38 = vmul.f32 %v274_v30, %v274_v30  ;;  %v597_v39 = vpack.c.bf16 %v276_v31, %v274_v30  ;;  %v281_v4 = vld [vmem:[%s875_s8 + $0xe0] sm:$0xff] }
  0x38   : > { %v342_v18 = vadd.f32 %v341_v9, %v296_v5  ;;  %v305_v43 = vmul.f32 %v273_v40, %v273_v40  ;;  %v308_v47 = vmul.f32 %v276_v31, %v276_v31  ;;  %v307_v49 = vmul.f32 %v275_v41, %v275_v41  ;;  %v283_v5 = vld [vmem:[%s875_s8 + $0xf0] sm:$0xff]  ;;  %v377_v17 = vld [vmem:[%s961_s0] sm:$0xff] }
  0x39   : > { %v321_v20 = vadd.f32 %v320_v14, %v295_v7  ;;  %588 = vmatpush1.bf16.msra.mxu0 %v587_v8  ;;  %v599_v50 = vpack.c.bf16 %v275_v41, %v273_v40  ;;  %v310_v52 = vmul.f32 %v278_v44, %v278_v44  ;;  %v601_v53 = vpack.c.bf16 %v280_v45, %v278_v44 }
  0x3a   : > { %v343_v23 = vadd.f32 %v342_v18, %v298_v10  ;;  %590 = vmatprep.subr.bf16.mxu0 %v589_v11  ;;  %v309_v57 = vmul.f32 %v277_v54, %v277_v54  ;;  %v312_v61 = vmul.f32 %v280_v45, %v280_v45  ;;  %v311_v63 = vmul.f32 %v279_v55, %v279_v55 }
  0x3b   : > { %v322_v28 = vadd.f32 %v321_v20, %v297_v15  ;;  %v603_v0 = vpack.c.bf16 %v279_v55, %v277_v54  ;;  %v314_v2 = vmul.f32 %v282_v58, %v282_v58  ;;  %v605_v3 = vpack.c.bf16 %v284_v59, %v282_v58 }
  0x3c   : > { %v344_v32 = vadd.f32 %v343_v23, %v300_v19  ;;  %v313_v7 = vmul.f32 %v281_v4, %v281_v4  ;;  %v316_v9 = vmul.f32 %v284_v59, %v284_v59  ;;  %v315_v11 = vmul.f32 %v283_v5, %v283_v5 }
  0x3d   : > { %v323_v34 = vadd.f32 %v322_v28, %v299_v21  ;;  %592 = vmatpush1.bf16.msra.mxu0 %v591_v22  ;;  %v607_v12 = vpack.c.bf16 %v283_v5, %v281_v4  ;;  %v462_v45 = vstv %s569_s11 }
  0x3e   : > { %v345_v37 = vadd.f32 %v344_v32, %v302_v24  ;;  %594 = vmatprep.subr.bf16.mxu0 %v593_v25 }
  0x3f   : > { %v324_v42 = vadd.f32 %v323_v34, %v301_v29 }
  0x40   : > { %v346_v46 = vadd.f32 %v345_v37, %v304_v33 }
  0x41   : > { %v325_v48 = vadd.f32 %v324_v42, %v303_v35  ;;  %596 = vmatpush1.bf16.msra.mxu0 %v595_v36  ;;  %v459_v42 = vlaneseq }
  0x42   : > { %v347_v51 = vadd.f32 %v346_v46, %v306_v38  ;;  %598 = vmatprep.subr.bf16.mxu0 %v597_v39 }
  0x43   : > { %v326_v56 = vadd.f32 %v325_v48, %v305_v43  ;;  %v460_v43 = vand.u32 127, %v459_v42 }
  0x44   : > { %v348_v60 = vadd.f32 %v347_v51, %v308_v47 }
  0x45   : > { %v327_v62 = vadd.f32 %v326_v56, %v307_v49  ;;  %600 = vmatpush1.bf16.msra.mxu0 %v599_v50  ;;  %v461_v44 = vadd.s32 128, %v460_v43  ;;  %v463_v49 = vadd.s32 %v462_v45, %v460_v43 }
  0x46   : > { %v349_v1 = vadd.f32 %v348_v60, %v310_v52  ;;  %602 = vmatprep.subr.bf16.mxu0 %v601_v53 }
  0x47   : > { %v328_v6 = vadd.f32 %v327_v62, %v309_v57  ;;  %v464_v52 = vadd.s32 %v462_v45, %v461_v44 }
  0x48   : > { %v350_v8 = vadd.f32 %v349_v1, %v312_v61 }
  0x49   : > { %v329_v10 = vadd.f32 %v328_v6, %v311_v63  ;;  %604 = vmatpush1.bf16.msra.mxu0 %v603_v0 }
  0x4a   : > { %v351_v13 = vadd.f32 %v350_v8, %v314_v2  ;;  %606 = vmatprep.subr.bf16.mxu0 %v605_v3 }
  0x4b   : > { %v330_v14 = vadd.f32 %v329_v10, %v313_v7 }
  0x4c   : > { %v352_v15 = vadd.f32 %v351_v13, %v316_v9 }
  0x4d   : > { %v331_v16 = vadd.f32 %v330_v14, %v315_v11  ;;  %608 = vmatpush1.bf16.msra.mxu0 %v607_v12 }
  0x4e   : > { %v353_v19 = vrot.slane %v352_v15, 4 }
  0x4f   : > { %v332_v18 = vrot.slane %v331_v16, 4 }
  0x50   : > { %443 = vmatmul.mubr.f32.vlgmr.msra.gmra.mrb[0].mxu0 %v377_v17  ;;  %v354_v21 = vadd.f32 %v353_v19, %v352_v15 }
  0x51   : > { %v333_v20 = vadd.f32 %v332_v18, %v331_v16 }
  0x52   : > { %v355_v23 = vrot.slane %v354_v21, 2 }
  0x53   : > { %v334_v22 = vrot.slane %v333_v20, 2 }
  0x54   : > { %v356_v25 = vadd.f32 %v355_v23, %v354_v21 }
  0x55   : > { %v335_v24 = vadd.f32 %v334_v22, %v333_v20 }
  0x56   : > { %v357_v27 = vrot.slane %v356_v25, 1 }
  0x57   : > { %v336_v26 = vrot.slane %v335_v24, 1 }
  0x58   : > { %v358_v29 = vadd.f32 %v357_v27, %v356_v25 }
  0x59   : > { %v337_v28 = vadd.f32 %v336_v26, %v335_v24 }
  0x5a   : > { %v360_v31 = vmax.f32 %v358_v29, 1e-24 }
  0x5b   : > { %v359_v30 = vmax.f32 %v337_v28, 1e-24 }
  0x5c   : > { %vm370_vm1 = vcmp.eq.f32.partialorder %v360_v31, inf  ;;  %v373_v38 = vand.u32 2147483648, %v360_v31  ;;  %vm372_vm3 = vcmp.eq.f32.partialorder %v360_v31, 0.0 }
  0x5d   : > { %651 = vrsqrt.f32 %v359_v30  ;;  %vm363_vm0 = vcmp.eq.f32.partialorder %v359_v30, inf  ;;  %v366_v36 = vand.u32 2147483648, %v359_v30  ;;  %vm365_vm2 = vcmp.eq.f32.partialorder %v359_v30, 0.0 }
  0x5e   : > { %653 = vrsqrt.f32 %v360_v31 }
  0x67   : > { %v652_v32 = vpop.eup %651 }
  0x68   : > { %v654_v33 = vpop.eup %653  ;;  %v362_v34 = vmul.f32 %v652_v32, %v359_v30 }
  0x69   : > { %v369_v35 = vmul.f32 %v654_v33, %v360_v31 }
  0x6a   : > { %v364_v37 = vsel %vm363_vm0, %v359_v30, %v362_v34 }
  0x6b   : > { %v371_v39 = vsel %vm370_vm1, %v360_v31, %v369_v35  ;;  %v367_v40 = vsel %vm365_vm2, %v366_v36, %v364_v37 }
  0x6c   : > { %v374_v41 = vsel %vm372_vm3, %v373_v38, %v371_v39  ;;  %655 = vrcp.f32 %v367_v40 }
  0x6d   : > { %657 = vrcp.f32 %v374_v41 }
  0x76   : > { %v656_v46 = vpop.eup %655 }
  0x77   : > { %v658_v47 = vpop.eup %657 }
  0xab   : > { %v467_v53 = vpop.permute.xlu0 %466 }
  0xac   : > { %vm468_vm4 = vcmp.eq.s32.totalorder %v467_v53, %v463_v49  ;;  %vm469_vm5 = vcmp.eq.s32.totalorder %v467_v53, %v464_v52 }
 0x123   : > { %v444_v48 = vpop.f32.mrb[0].mxu0 }
 0x124   : > { %v449_v50 = vmul.f32 %v656_v46, %v444_v48  ;;  %v446_v51 = vpop.f32.mrb[1].mxu0 }
 0x125   : > { %v450_v54 = vmul.f32 %v658_v47, %v446_v51 }
 0x126   : > { %v565_v55 = vclamps-f32 %v449_v50, 1.0 }
 0x127   : > { %v566_v56 = vclamps-f32 %v450_v54, 1.0 }
 0x128   : > { %v567_v57 = vadd.f32 -0.35, %v565_v55 }
 0x129   : > { %v568_v58 = vadd.f32 -0.35, %v566_v56 }
 0x12a   : > { %v470_v59 = vsel %vm468_vm4, %v567_v57, %v565_v55 }
 0x12b   : > { %v471_v60 = vsel %vm469_vm5, %v568_v58, %v566_v56  ;;  %v472_v61 = vmul.f32 30.0, %v470_v59 }
 0x12c   : > { %v473_v62 = vmul.f32 30.0, %v471_v60 }
 0x12d   : > { %474 = vst [vmem:[%s250_s16] sm:$0xff] %v472_v61 }
 0x12e   : > { %475 = vst [vmem:[%s250_s16 + $0x8] sm:$0xff] %v473_v62 }
 0x12f   : > { %672 = shalt.err (!%p669_p5)
}
 0x130   : > { %s673_s4 = scalar_lea.hbm %s918_s25, 256  ;;  %s677_s7 = scalar_lea.hbm %s964_s3, 1024 }
 0x131   : > { %p674_p7 = scmp.ne.s32.totalorder %s918_s25, %s673_s4  ;;  %p678_p11 = scmp.lt.u32.totalorder %s918_s25, %s964_s3 }
 0x132   : > { %p679_p12 = scmp.lt.u32.totalorder %s677_s7, %s673_s4  ;;  %p681_p0 = scmp.lt.u32.totalorder %s673_s4, %s918_s25 }
 0x133   : > { %p675_p9 = pnand %p674_p7, %p784_p6 }
 0x134   : > { %p680_p13 = por %p679_p12, %p678_p11 }
 0x135   : > { %p676_p10 = pneg %p675_p9 }
 0x136   : > { %p682_p1 = por %p681_p0, %p680_p13 }
 0x138   : > { %p683_p2 = pnand %p682_p1, %p676_p10 }
 0x13a   : > { %686 = shalt.err (!%p683_p2)
}
 0x13b   : > { %609 = dma.vmem_to_hbm [thread:$0]  (%p784_p6), %s920_s19, 256, %s918_s25, %s477_s26  }
 0x13c PF: > { %p615_p3 = scmp.ge.s32.totalorder %s721_s15, 2  ;;  %s503_s10 = sand.u32 1, %s709_s12  }
 0x13d   : > { %s504_s11 = scalar_lea.sflag [#allocation4], %s503_s10 }
 0x13e   : > { %p612_p4 = pnand %p615_p3, %p788_p8 }
 0x140   : > { %704 = dma.done.wait (!%p612_p4), %s504_s11, 256  }
 0x141   : > { %706 = vsyncadd (!%p612_p4), %s504_s11, 4294967040  ;;  %p13_p5 = scmp.ge.s32.totalorder %s769_s18, 6   ;;  %s967_s12 = smov %s713_s13 }
 0x142   : > { %s968_s13 = smov %s717_s14  ;;  %s969_s14 = smov %s782_s21 }
 0x143   : > { %s970_s15 = smov %s769_s18  ;;  %15 = sbr.rel (!%p13_p5) target bundleno = 3 (0x3), region = 95 }
 0x14a   :  { %509 = vsyncpa [#allocation4], 1 }
 0x14b   :  { %511 = vsyncpa [#allocation4 + $0x1], 1 }

</bundles_post_ra>
